<compile_context>
chip_gen: v7x
topology: tpu7x:2x2x1
jax: 0.10.0
libtpu: 0.0.40
codegen_flags: <defaults>
</compile_context>

<pallas_src>
import functools

import jax
import jax.numpy as jnp
from jax.experimental import pallas as pl
from jax.experimental.pallas import tpu as pltpu


def _edge_score_kernel(src_ref, dst_ref, z_ref, wz_ref, out_ref, *,
                       apply_sigmoid):
    # src_ref/dst_ref: [1, TE] int32 edge-endpoint ids (edges on lanes).
    # z_ref:  [D, N_pad] f32  = z^T          (resident across grid steps)
    # wz_ref: [D, N_pad] f32  = (z @ W^T+b)^T (resident across grid steps)
    # out_ref: [1, TE] f32 lane-dense scores.
    n_nodes = z_ref.shape[1]
    te = src_ref.shape[1]

    # One-hot gather via the MXU (N is small): one_hot[n, e] = (idx[e] == n).
    node_iota = jax.lax.broadcasted_iota(jnp.int32, (n_nodes, te), 0)
    oh_src = (node_iota == src_ref[...]).astype(jnp.float32)      # [N, TE]
    oh_dst = (node_iota == dst_ref[...]).astype(jnp.float32)      # [N, TE]

    zi_t = jnp.dot(z_ref[...], oh_src,
                   preferred_element_type=jnp.float32)            # [D, TE]
    wj_t = jnp.dot(wz_ref[...], oh_dst,
                   preferred_element_type=jnp.float32)            # [D, TE]

    # Elementwise product (VPU) + sublane reduce over D (XLU) -> [1, TE].
    val = jnp.sum(zi_t * wj_t, axis=0, keepdims=True)
    if apply_sigmoid:
        val = jax.nn.sigmoid(val)
    out_ref[...] = val                        # lane-dense, unmasked store


@functools.partial(jax.jit, static_argnames=("sigmoid", "edge_tile"))
def latent_space_decoder_forward(z, edge_index, weight, bias,
                                 sigmoid=True, edge_tile=8192):
    """z: [N, D] f32, edge_index: [2, E] int, weight: [D, D] (PyTorch Linear
    weight), bias: [D].  Returns [E] edge scores."""
    N, D = z.shape
    E = edge_index.shape[-1]

    # --- glue (XLA): per-node Linear, done ONCE per node, kept transposed ---
    # wz_t[d, n] = (W @ z[n] + b)[d]  == (z @ W^T + b).T
    z_f32 = z.astype(jnp.float32)
    wz_t = (weight.astype(jnp.float32) @ z_f32.T
            + bias.astype(jnp.float32)[:, None])                  # [D, N]
    z_t = z_f32.T                                                 # [D, N]

    # Pad the node axis to a multiple of 8 (zero columns, never indexed).
    N_pad = ((N + 7) // 8) * 8
    if N_pad != N:
        z_t = jnp.pad(z_t, ((0, 0), (0, N_pad - N)))
        wz_t = jnp.pad(wz_t, ((0, 0), (0, N_pad - N)))

    # --- tile selection: lane multiple of 128, keep >= 2 grid steps when ----
    # --- possible so the "parallel" edge axis shards over v7x's 2 TCs.  ----
    half = -(-(-(-E // 2)) // 128) * 128        # ceil(ceil(E/2)/128)*128
    tile = max(128, (min(int(edge_tile), half) // 128) * 128)
    n_tiles = pl.cdiv(E, tile)
    E_pad = n_tiles * tile
    pad = E_pad - E

    # Pad edges with dummy index 0 (safe: padded outputs are sliced off).
    src = jnp.pad(edge_index[0].astype(jnp.int32), (0, pad)).reshape(1, E_pad)
    dst = jnp.pad(edge_index[1].astype(jnp.int32), (0, pad)).reshape(1, E_pad)

    # Advisory cost estimate: two [D,N]@[N,TE] matmuls + mul/reduce per tile.
    flops = 4 * D * N_pad * E_pad + 2 * D * E_pad
    bytes_accessed = 2 * 4 * E_pad + 4 * E_pad + 2 * D * N_pad * 4
    transcendentals = E_pad if sigmoid else 0
    cost = pl.CostEstimate(flops=flops, transcendentals=transcendentals,
                           bytes_accessed=bytes_accessed)

    out = pl.pallas_call(
        functools.partial(_edge_score_kernel, apply_sigmoid=sigmoid),
        out_shape=jax.ShapeDtypeStruct((1, E_pad), jnp.float32),
        grid_spec=pltpu.PrefetchScalarGridSpec(
            num_scalar_prefetch=0,
            grid=(n_tiles,),
            in_specs=[
                pl.BlockSpec((1, tile), lambda i: (0, i)),       # src ids
                pl.BlockSpec((1, tile), lambda i: (0, i)),       # dst ids
                pl.BlockSpec((D, N_pad), lambda i: (0, 0)),      # z^T (resident)
                pl.BlockSpec((D, N_pad), lambda i: (0, 0)),      # (Wz)^T (resident)
            ],
            out_specs=pl.BlockSpec((1, tile), lambda i: (0, i)),
        ),
        compiler_params=pltpu.CompilerParams(
            dimension_semantics=("parallel",),      # shards over v7x's 2 TCs
            vmem_limit_bytes=32 * 1024 * 1024),     # above v5e's 16 MiB default
        cost_estimate=cost,
    )(src, dst, z_t, wz_t)

    return out[0, :E]                                             # [E]


def latent_space_decoder(z, edge_index, weight, bias, sigmoid=True,
                         edge_tile=8192):
    return latent_space_decoder_forward(z, edge_index, weight, bias,
                                        sigmoid=sigmoid, edge_tile=edge_tile)


if __name__ == "__main__":
    key = jax.random.PRNGKey(0)
    k_z, k_w, k_b, k_e0, k_e1 = jax.random.split(key, 5)

    N = 16        # number of nodes
    D = 32        # n_latent
    E = 200       # number of edges (deliberately NOT a tile multiple)

    z = jax.random.normal(k_z, (N, D), dtype=jnp.float32)
    bound = 1.0 / (D ** 0.5)
    weight = jax.random.uniform(k_w, (D, D), minval=-bound, maxval=bound,
                                dtype=jnp.float32)
    bias = jax.random.uniform(k_b, (D,), minval=-bound, maxval=bound,
                              dtype=jnp.float32)
    edge_index = jnp.stack([
        jax.random.randint(k_e0, (E,), 0, N, dtype=jnp.int32),
        jax.random.randint(k_e1, (E,), 0, N, dtype=jnp.int32),
    ], axis=0)                                        # [2, E]

    # Reference (plain JAX version of the PyTorch forward).
    zi_ref = z[edge_index[0]]
    zj_ref = z[edge_index[1]]
    pre = jnp.sum(zi_ref * (zj_ref @ weight.T + bias), axis=1)

    # sigmoid=True path
    out_sig = latent_space_decoder(z, edge_index, weight, bias, sigmoid=True)
    out_sig = jax.block_until_ready(out_sig)
    assert out_sig.shape == (E,)
    assert jnp.allclose(out_sig, jax.nn.sigmoid(pre), atol=1e-5, rtol=1e-5)

    # sigmoid=False path
    out_raw = latent_space_decoder(z, edge_index, weight, bias, sigmoid=False)
    out_raw = jax.block_until_ready(out_raw)
    assert out_raw.shape == (E,)
    assert jnp.allclose(out_raw, pre, atol=1e-5, rtol=1e-5)

    print("KERNEL_OK")
</pallas_src>

<mosaic_0001>
module attributes {stable_mosaic.version = 11 : i64} {
  func.func @_edge_score_kernel(%arg0: i32, %arg1: memref<1x128xi32, #tpu.memory_space<vmem>>, %arg2: memref<1x128xi32, #tpu.memory_space<vmem>>, %arg3: memref<32x16xf32, #tpu.memory_space<vmem>>, %arg4: memref<32x16xf32, #tpu.memory_space<vmem>>, %arg5: memref<1x128xf32, #tpu.memory_space<vmem>>) attributes {dimension_semantics = [#tpu.dimension_semantics<parallel>], iteration_bounds = array<i64: 2>, scalar_prefetch = 0 : i64, scratch_operands = 0 : i64, tpu.core_type = #tpu.core_type<tc>, window_params = [{transform_indices = @transform_0, window_bounds = array<i64: 1, 128>}, {transform_indices = @transform_1, window_bounds = array<i64: 1, 128>}, {pipeline_mode = #tpu.pipeline_mode<synchronous>, transform_indices = @transform_2, window_bounds = array<i64: 32, 16>}, {pipeline_mode = #tpu.pipeline_mode<synchronous>, transform_indices = @transform_3, window_bounds = array<i64: 32, 16>}, {transform_indices = @transform_4, window_bounds = array<i64: 1, 128>}]} {
    %0 = tpu.iota {dimensions = array<i32: 0>} : vector<16x128xi32>
    %c0 = arith.constant 0 : index
    %c0_0 = arith.constant 0 : index
    %1 = vector.load %arg1[%c0, %c0_0] : memref<1x128xi32, #tpu.memory_space<vmem>>, vector<1x128xi32>
    %2 = vector.broadcast %1 : vector<1x128xi32> to vector<16x128xi32>
    %3 = arith.cmpi eq, %0, %2 : vector<16x128xi32>
    %4 = arith.extui %3 : vector<16x128xi1> to vector<16x128xi32>
    %5 = arith.sitofp %4 : vector<16x128xi32> to vector<16x128xf32>
    %c0_1 = arith.constant 0 : index
    %c0_2 = arith.constant 0 : index
    %6 = vector.load %arg2[%c0_1, %c0_2] : memref<1x128xi32, #tpu.memory_space<vmem>>, vector<1x128xi32>
    %7 = vector.broadcast %6 : vector<1x128xi32> to vector<16x128xi32>
    %8 = arith.cmpi eq, %0, %7 : vector<16x128xi32>
    %9 = arith.extui %8 : vector<16x128xi1> to vector<16x128xi32>
    %10 = arith.sitofp %9 : vector<16x128xi32> to vector<16x128xf32>
    %c0_3 = arith.constant 0 : index
    %c0_4 = arith.constant 0 : index
    %11 = vector.load %arg3[%c0_3, %c0_4] : memref<32x16xf32, #tpu.memory_space<vmem>>, vector<32x16xf32>
    %cst = arith.constant dense<0.000000e+00> : vector<32x128xf32>
    %12 = tpu.matmul %11, %5, %cst {dimension_numbers = #tpu.dot_dimension_numbers<[1], [0], [0], [1], [0, 0, 1, 1], [], []>} : vector<32x16xf32>, vector<16x128xf32>, vector<32x128xf32> -> vector<32x128xf32>
    %c0_5 = arith.constant 0 : index
    %c0_6 = arith.constant 0 : index
    %13 = vector.load %arg4[%c0_5, %c0_6] : memref<32x16xf32, #tpu.memory_space<vmem>>, vector<32x16xf32>
    %cst_7 = arith.constant dense<0.000000e+00> : vector<32x128xf32>
    %14 = tpu.matmul %13, %10, %cst_7 {dimension_numbers = #tpu.dot_dimension_numbers<[1], [0], [0], [1], [0, 0, 1, 1], [], []>} : vector<32x16xf32>, vector<16x128xf32>, vector<32x128xf32> -> vector<32x128xf32>
    %15 = arith.mulf %12, %14 : vector<32x128xf32>
    %cst_8 = arith.constant dense<0.000000e+00> : vector<128xf32>
    %16 = vector.multi_reduction <add>, %15, %cst_8 [0] : vector<32x128xf32> to vector<128xf32>
    %17 = vector.shape_cast %16 : vector<128xf32> to vector<1x128xf32>
    %18 = arith.negf %17 : vector<1x128xf32>
    %19 = math.exp %18 : vector<1x128xf32>
    %cst_9 = arith.constant 1.000000e+00 : f32
    %20 = vector.broadcast %cst_9 : f32 to vector<1x128xf32>
    %21 = arith.addf %20, %19 : vector<1x128xf32>
    %22 = arith.divf %20, %21 : vector<1x128xf32>
    %c0_10 = arith.constant 0 : index
    %c0_11 = arith.constant 0 : index
    %23 = vector.load %arg5[%c0_10, %c0_11] : memref<1x128xf32, #tpu.memory_space<vmem>>, vector<1x128xf32>
    tpu.vector_store %arg5[%c0_10, %c0_11], %22 {strides = array<i32>} : memref<1x128xf32, #tpu.memory_space<vmem>>, vector<1x128xf32>,
    return
  }
  func.func @transform_0(%arg0: i32) -> (i32, i32) {
    %c0_i32 = arith.constant 0 : i32
    %c0_i32_0 = arith.constant 0 : i32
    return %c0_i32, %arg0 : i32, i32
  }
  func.func @transform_1(%arg0: i32) -> (i32, i32) {
    %c0_i32 = arith.constant 0 : i32
    %c0_i32_0 = arith.constant 0 : i32
    return %c0_i32, %arg0 : i32, i32
  }
  func.func @transform_2(%arg0: i32) -> (i32, i32) {
    %c0_i32 = arith.constant 0 : i32
    %c0_i32_0 = arith.constant 0 : i32
    %c0_i32_1 = arith.constant 0 : i32
    return %c0_i32, %c0_i32_0 : i32, i32
  }
  func.func @transform_3(%arg0: i32) -> (i32, i32) {
    %c0_i32 = arith.constant 0 : i32
    %c0_i32_0 = arith.constant 0 : i32
    %c0_i32_1 = arith.constant 0 : i32
    return %c0_i32, %c0_i32_0 : i32, i32
  }
  func.func @transform_4(%arg0: i32) -> (i32, i32) {
    %c0_i32 = arith.constant 0 : i32
    %c0_i32_0 = arith.constant 0 : i32
    return %c0_i32, %arg0 : i32, i32
  }
}

</mosaic_0001>

<bundles_post_ra>
// kernel: latent_space_decoder_forward.1
= control target key start
LH: loop header
LB: loop body
LE: loop exit
PB: predicated region body
PF: predicated region fallthrough
CT: control target
= control target key end

     0   :  { %9 = vsyncpa [#allocation3], 0  ;;  %s861_s0 = inlined_call_operand.vmem [shape: s32[1,256], index: 0, kind: input, shape index: {}]   ;;  %s862_s1 = inlined_call_operand.vmem [shape: s32[1,256], index: 1, kind: input, shape index: {}]   ;;  %s863_s2 = inlined_call_operand.vmem [shape: f32[32,16], index: 2, kind: input, shape index: {}]   ;;  %s864_s3 = inlined_call_operand.vmem [shape: f32[32,16], index: 3, kind: input, shape index: {}]   ;;  %s865_s4 = inlined_call_operand.hbm [shape: f32[1,256], index: 4, kind: output, shape index: {}]  }
   0x1   :  { %11 = vsyncpa [#allocation3 + $0x1], 0  ;;  %s726_s15 = smov 0   ;;  %s728_s16 = smov 0  }
   0x2   :  { %s730_s17 = smov 0   ;;  %s732_s18 = smov 0  }
   0x3 LB: > { %s747_s19 = sadd.s32 4294967295, %s697_s18   ;;  %s525_s20 = sadd.s32 4294967294, %s697_s18   ;;  %s697_s18 = sphi %s732_s18, %s871_s18   ;;  %s693_s17 = sphi %s730_s17, %s870_s17   ;;  %s689_s16 = sphi %s728_s16, %s869_s16   ;;  %s685_s15 = sphi %s726_s15, %s868_s15  }
   0x4   : > { %s751_s21 = sadd.s32 1, %s697_s18   ;;  %s118_s22 = sadd.s32 1, %s693_s17 }
   0x5   : > { %s115_s23 = ssub.s32 %s697_s18, %s751_s21  ;;  %p128_p0 = scmp.ne.s32.totalorder %s693_s17, %s689_s16 }
   0x6   : > { %p116_p1 = scmp.eq.s32.totalorder %s115_s23, 0  ;;  %p129_p2 = scmp.eq.s32.totalorder %s747_s19, 1 }
   0x7   : > { %p134_p3 = scmp.ne.s32.totalorder %s689_s16, %s685_s15  ;;  %p135_p4 = scmp.eq.s32.totalorder %s525_s20, 1 }
   0x8   : > { %s762_s24 = scalar_select %p116_p1, %s693_s17, %s118_s22  }
   0x9   : > { %p764_p5 = por %p129_p2, %p128_p0  ;;  %p768_p6 = por %p135_p4, %p134_p3 }
   0xa   : > { %p528_p7 = scmp.ge.s32.totalorder %s697_s18, 1  ;;  %p171_p8 = scmp.lt.s32.totalorder %s697_s18, 3 }
   0xc   : > { %p172_p9 = pnand %p528_p7, %p171_p8 }
   0xd   : > { %p197_p10 = scmp.lt.s32.totalorder (!%p172_p9), %s747_s19, 1  ;;  %v203_v0 = vlaneseq (!%p172_p9)  ;;  %v228_v1 = vld [vmem:[%s863_s2] sm:$0xff] (!%p172_p9)  ;;  %vm232_vm0 = vcmask (!%p172_p9), 130048   ;;  %v699_v7 = vmov (!%p172_p9), 1.0|1.0   ;;  %v229_v8 = vld [vmem:[%s863_s2 + $0x8] sm:$0xff] (!%p172_p9) }
   0xe   : > { %175 = sbr.rel (%p172_p9) target bundleno = 307 (0x133), region = 36  ;;  %v330_v2 = vld [vmem:[%s864_s3] sm:$0xff] (!%p172_p9)  ;;  %567 = vmatprep.mubr.msk.f32.mxu0 (!%p172_p9), %vm232_vm0, %v228_v1  ;;  %v331_v9 = vld [vmem:[%s864_s3 + $0x8] sm:$0xff] (!%p172_p9)  ;;  %v230_v10 = vld [vmem:[%s863_s2 + $0x10] sm:$0xff] (!%p172_p9)  ;;  %s195_s7 = sand.u32 (!%p172_p9), 1, %s689_s16  }
   0xf   : > { %577 = vmatprep.mubr.msk.f32.mxu1 (!%p172_p9), %vm232_vm0, %v330_v2  ;;  %v204_v3 = vshrl.u32 (!%p172_p9), %v203_v0, 7  ;;  %v332_v11 = vld [vmem:[%s864_s3 + $0x10] sm:$0xff] (!%p172_p9)  ;;  %v231_v12 = vld [vmem:[%s863_s2 + $0x18] sm:$0xff] (!%p172_p9)  ;;  %s196_s9 = scalar_lea.vmem (!%p172_p9), [#allocation2], %s195_s7  ;;  %s452_s14 = scalar_lea.sflag (!%p172_p9), [#allocation3], %s195_s7 }
  0x10   : > { %v333_v13 = vld [vmem:[%s864_s3 + $0x18] sm:$0xff] (!%p172_p9)  ;;  %s464_s10 = sshll.u32 (!%p172_p9), %s196_s9, 4  ;;  %s821_s10 = int_to_ptr.vmem [resolvable:$true] %s464_s10 }
  0x11   : > { %v205_v4 = vadd.s32 (!%p172_p9), 8, %v204_v3  ;;  %s635_s20 = scalar_lea.vmem (!%p172_p9), %s821_s10, 16 }
  0x12   : > { %p636_p11 = scmp.ne.s32.totalorder (!%p172_p9), %s821_s10, %s635_s20 }
  0x14   : > { %p637_p12 = pnand (!%p172_p9), %p636_p11, %p764_p5 }
  0x15   : > { %s198_s5 = scalar_select %p197_p10, %s747_s19, 1 }
  0x16   : > { %p638_p13 = pneg %p637_p12 }
  0x17   : > { %s199_s8 = scalar_lea.vmem %s861_s0, %s198_s5  ;;  %s202_s11 = scalar_lea.vmem %s862_s1, %s198_s5 }
  0x18   : > { %v529_v5 = vld [vmem:[%s199_s8] ss:$0 sm:$0xff]  ;;  %s548_s8 = sshll.u32 %s747_s19, 4  ;;  %s700_s19 = smov [#allocation2]  }
  0x19   : > { %v532_v6 = vld [vmem:[%s202_s11] ss:$0 sm:$0xff]  ;;  %vm211_vm1 = vcmp.eq.s32.totalorder %v204_v3, %v529_v5  ;;  %vm212_vm2 = vcmp.eq.s32.totalorder %v205_v4, %v529_v5  ;;  %s819_s13 = scalar_lea.hbm %s865_s4, %s548_s8  ;;  %s639_s22 = sshll.u32 %s700_s19, 4  ;;  %s640_s22 = int_to_ptr.vmem [resolvable:$false] %s639_s22 }
  0x1a   : > { %vm222_vm3 = vcmp.eq.s32.totalorder %v204_v3, %v532_v6  ;;  %vm223_vm4 = vcmp.eq.s32.totalorder %v205_v4, %v532_v6  ;;  %vm583_vm5 = vmpackc.low %vm212_vm2, %vm211_vm1  ;;  %s641_s23 = scalar_lea.vmem %s640_s22, 32  ;;  %p642_p0 = scmp.lt.s32.totalorder %s821_s10, %s640_s22 }
  0x1b   : > { %584 = vmatprep.subr.msk.bf16.mxu0 %vm583_vm5, %v699_v7  ;;  %vm587_vm6 = vmpackc.low %vm223_vm4, %vm222_vm3  ;;  %p643_p1 = scmp.lt.s32.totalorder %s641_s23, %s635_s20 }
  0x1c   : > { %588 = vmatprep.subr.msk.bf16.mxu1 %vm587_vm6, %v699_v7  ;;  %586 = vmatpush3.bf16.msk.msra.mxu0 %vm583_vm5, %v699_v7 }
  0x1d   : > { %590 = vmatpush3.bf16.msk.msra.mxu1 %vm587_vm6, %v699_v7  ;;  %p644_p2 = por %p643_p1, %p642_p0 }
  0x1f   : > { %568 = vmatmul.mubr.msk.f32.vlgmr.msra.gmra.mrb[0].mxu0 %vm232_vm0, %v229_v8  ;;  %p645_p3 = pnand %p644_p2, %p638_p13 }
  0x20   : > { %578 = vmatmul.mubr.msk.f32.vlgmr.msra.gmra.mrb[0].mxu1 %vm232_vm0, %v331_v9  ;;  %570 = vmatprep.mubr.msk.f32.mxu0 %vm232_vm0, %v230_v10 }
  0x21   : > { %580 = vmatprep.mubr.msk.f32.mxu1 %vm232_vm0, %v332_v11 }
  0x23   : > { %571 = vmatmul.mubr.msk.f32.gmra.mrb[2].mxu0 %vm232_vm0, %v231_v12 }
  0x24   : > { %581 = vmatmul.mubr.msk.f32.gmra.mrb[2].mxu1 %vm232_vm0, %v333_v13 }
  0xf2   : > { %v569_v14 = vpop.f32.mrb[0].mxu0 }
  0xf3   : > { %v579_v15 = vpop.f32.mrb[0].mxu1  ;;  %v311_v16 = vpop.f32.mrb[1].mxu0 }
  0xf4   : > { %v432_v17 = vmul.f32 %v579_v15, %v569_v14  ;;  %v412_v18 = vpop.f32.mrb[1].mxu1 }
  0xf5   : > { %v431_v19 = vmul.f32 %v412_v18, %v311_v16 }
  0xf6   : > { %v572_v20 = vpop.f32.mrb[2].mxu0 }
  0xf7   : > { %v435_v21 = vadd.f32 %v432_v17, %v431_v19  ;;  %v582_v22 = vpop.f32.mrb[2].mxu1  ;;  %v321_v23 = vpop.f32.mrb[3].mxu0 }
  0xf8   : > { %v434_v24 = vmul.f32 %v582_v22, %v572_v20  ;;  %v422_v25 = vpop.f32.mrb[3].mxu1 }
  0xf9   : > { %v433_v26 = vmul.f32 %v422_v25, %v321_v23 }
  0xfb   : > { %v436_v27 = vadd.f32 %v435_v21, %v433_v26 }
  0xfd   : > { %v437_v28 = vadd.f32 %v436_v27, %v434_v24 }
  0xff   : > { %v438_v29 = vrot.slane %v437_v28, 4 }
 0x101   : > { %v439_v30 = vadd.f32 %v438_v29, %v437_v28 }
 0x103   : > { %v440_v31 = vrot.slane %v439_v30, 2 }
 0x105   : > { %v441_v32 = vadd.f32 %v440_v31, %v439_v30 }
 0x107   : > { %v442_v33 = vrot.slane %v441_v32, 1 }
 0x109   : > { %v443_v34 = vadd.f32 %v442_v33, %v441_v32 }
 0x10b   : > { %v547_v35 = vmul.f32 -1.442695, %v443_v34 }
 0x10d   : > { %631 = vpow2.f32 %v547_v35 }
 0x117   : > { %v632_v36 = vpop.eup %631 }
 0x118   : > { %v447_v37 = vadd.f32 1.0, %v632_v36 }
 0x11a   : > { %633 = vrcp.f32 %v447_v37 }
 0x124   : > { %v634_v38 = vpop.eup %633 }
 0x125   : > { %450 = vst [vmem:[%s196_s9] sm:$0x1] %v634_v38 }
 0x126   : > { %648 = shalt.err (!%p645_p3)
}
 0x127   : > { %s649_s27 = scalar_lea.hbm %s819_s13, 16  ;;  %s653_s30 = scalar_lea.hbm %s865_s4, 32 }
 0x128   : > { %p650_p4 = scmp.ne.s32.totalorder %s819_s13, %s649_s27  ;;  %p654_p9 = scmp.lt.u32.totalorder %s819_s13, %s865_s4 }
 0x129   : > { %p655_p10 = scmp.lt.u32.totalorder %s653_s30, %s649_s27  ;;  %p657_p12 = scmp.lt.u32.totalorder %s649_s27, %s819_s13 }
 0x12a   : > { %p651_p7 = pnand %p650_p4, %p764_p5 }
 0x12b   : > { %p656_p11 = por %p655_p10, %p654_p9 }
 0x12c   : > { %p652_p8 = pneg %p651_p7 }
 0x12d   : > { %p658_p13 = por %p657_p12, %p656_p11 }
 0x12f   : > { %p659_p0 = pnand %p658_p13, %p652_p8 }
 0x131   : > { %662 = shalt.err (!%p659_p0)
}
 0x132   : > { %591 = dma.vmem_to_hbm [thread:$0]  (%p764_p5), %s821_s10, 16, %s819_s13, %s452_s14  }
 0x133 PF: > { %p597_p1 = scmp.ge.s32.totalorder %s697_s18, 2  ;;  %s476_s7 = sand.u32 1, %s685_s15  }
 0x134   : > { %s477_s8 = scalar_lea.sflag [#allocation3], %s476_s7 }
 0x135   : > { %p594_p2 = pnand %p597_p1, %p768_p6 }
 0x137   : > { %680 = dma.done.wait (!%p594_p2), %s477_s8, 16  }
 0x138   : > { %682 = vsyncadd (!%p594_p2), %s477_s8, 4294967280  ;;  %p14_p3 = scmp.ge.s32.totalorder %s751_s21, 4   ;;  %s868_s15 = smov %s689_s16 }
 0x139   : > { %s869_s16 = smov %s693_s17  ;;  %s870_s17 = smov %s762_s24 }
 0x13a   : > { %s871_s18 = smov %s751_s21  ;;  %16 = sbr.rel (!%p14_p3) target bundleno = 3 (0x3), region = 74 }
 0x141   :  { %481 = vsyncpa [#allocation3], 1 }
 0x142   :  { %483 = vsyncpa [#allocation3 + $0x1], 1 }

</bundles_post_ra>
